<compile_context>
chip_gen: v7x
topology: tpu7x:2x2x1
jax: 0.10.0
libtpu: 0.0.40
codegen_flags: <defaults>
</compile_context>

<pallas_src>
import functools
import math

import jax
import jax.numpy as jnp
from jax.experimental import pallas as pl
from jax.experimental.pallas import tpu as pltpu


def _round_up(v, m):
    return -(-v // m) * m


def _cdiv(a, b):
    return -(-a // b)


def _token_label_head_kernel(x_ref, w_ref, b_ref, o_ref, *, compute_dtype):
    # x_ref: (TILE_M, C) native dtype   w_ref: (C, TILE_K) compute dtype
    # b_ref: (1, TILE_K) f32            o_ref: (TILE_M, TILE_K) out dtype
    x = x_ref[...].astype(compute_dtype)          # per-tile cast on the VPU
    acc = jnp.dot(x, w_ref[...], preferred_element_type=jnp.float32)
    o_ref[...] = (acc + b_ref[...]).astype(o_ref.dtype)


def prepare_fc_params(fc_weight, fc_bias, compute_dtype=jnp.bfloat16):
    """(K, C, 1, 1) conv weight -> (C, K) matmul weight + (1, K) f32 bias.

    Cheap (K*C elements); hoist out of the hot path when possible."""
    K, C = fc_weight.shape[0], fc_weight.shape[1]
    w = jnp.transpose(fc_weight.reshape(K, C).astype(compute_dtype))  # (C, K)
    b = fc_bias.astype(jnp.float32).reshape(1, K)
    return w, b


def _vmem_capacity_bytes():
    try:
        return int(pltpu.get_tpu_info().vmem_capacity_bytes)
    except Exception:
        return 64 << 20   # conservative default (v7x per-core VMEM)


def token_label_head(x_tokens, fc_weight, fc_bias, *,
                     compute_dtype=jnp.bfloat16, out_dtype=None,
                     max_tile_m=1024, min_m_steps=8):
    """Forward pass of TokenLabelHead (post-backbone part).

    x_tokens : (B, N, C)  backbone token features, N = H*H (+1 if cls token)
    fc_weight: (K, C, 1, 1)  nn.Conv2d(C, K, kernel_size=1) weight
    fc_bias  : (K,)
    returns  : (B, H, H, K)  — matches PyTorch's x.permute(0, 2, 3, 1)
    """
    B, N, C = x_tokens.shape
    H = math.isqrt(N)
    if N == H * H + 1:
        x_tokens = x_tokens[:, 1:, :]          # drop cls token (one copy)
        N = H * H
    assert N == H * H, "token count must be a perfect square (+ optional cls)"
    K = fc_weight.shape[0]
    if out_dtype is None:
        out_dtype = x_tokens.dtype             # pass bf16 to halve writeback

    w, b = prepare_fc_params(fc_weight, fc_bias, compute_dtype)

    # Flatten batch into the row axis; after the (contiguous) cls-drop this
    # reshape is free.  No cast, no pad: the kernel reads native-dtype rows.
    M = B * N
    x_flat = x_tokens.reshape(M, C)

    in_bpe = jnp.dtype(x_flat.dtype).itemsize
    cd_bpe = jnp.dtype(compute_dtype).itemsize
    w_bpe = cd_bpe
    out_bpe = jnp.dtype(out_dtype).itemsize

    vmem_cap = _vmem_capacity_bytes()
    usable = int(0.70 * vmem_cap)

    # ---- K tiling: keep the whole (C, K) weight resident when it fits,
    # otherwise stream 128-aligned column blocks over a second grid axis.
    if 2 * C * K * w_bpe <= usable // 2:
        tile_k, nk = K, 1
    else:
        tile_k = max(128, ((usable // 2) // (2 * C * w_bpe)) // 128 * 128)
        tile_k = min(tile_k, _round_up(K, 128))
        nk = _cdiv(K, tile_k)
        if nk == 1:
            tile_k = K                          # full dim -> no K padding
    nk = _cdiv(K, tile_k)

    # ---- M tiling: 16-aligned, big enough to amortize per-step overhead,
    # small enough to give >= min_m_steps pipeline steps and fit VMEM
    # (including the f32 dot accumulator and the in-kernel cast temp).
    def tile_bytes(tm):
        return (2 * tm * C * in_bpe            # x tiles (double buffered)
                + tm * C * cd_bpe              # in-kernel cast temp
                + 2 * C * tile_k * w_bpe       # weight tiles
                + 2 * tile_k * 4               # bias tiles
                + 2 * tm * tile_k * out_bpe    # out tiles (double buffered)
                + tm * tile_k * 4)             # f32 dot accumulator

    tile_m = min(max_tile_m, _round_up(max(M, 1), 16))
    tile_m = min(tile_m, max(16, _round_up(_cdiv(M, min_m_steps), 16)))
    while tile_m > 16 and tile_bytes(tile_m) > usable:
        tile_m -= 16
    nm = _cdiv(M, tile_m)

    vmem_limit = int(tile_bytes(tile_m) * 1.3) + (2 << 20)
    vmem_limit = max(8 << 20, min(vmem_limit, int(0.85 * vmem_cap)))

    grid = (nk, nm)   # m innermost -> weight/bias blocks stay resident per k

    kernel = functools.partial(_token_label_head_kernel,
                               compute_dtype=compute_dtype)

    out = pl.pallas_call(
        kernel,
        out_shape=jax.ShapeDtypeStruct((M, K), out_dtype),
        grid_spec=pltpu.PrefetchScalarGridSpec(
            num_scalar_prefetch=0,
            grid=grid,
            in_specs=[
                pl.BlockSpec((tile_m, C), lambda k, m: (m, 0)),   # tokens
                pl.BlockSpec((C, tile_k), lambda k, m: (0, k)),   # weight
                pl.BlockSpec((1, tile_k), lambda k, m: (0, k)),   # bias
            ],
            out_specs=pl.BlockSpec((tile_m, tile_k), lambda k, m: (m, k)),
        ),
        compiler_params=pltpu.CompilerParams(
            dimension_semantics=("parallel", "parallel"),
            vmem_limit_bytes=vmem_limit),
    )(x_flat, w, b)

    return out.reshape(B, H, H, K)


def _reference(x_tokens, fc_weight, fc_bias):
    """Pure-JAX f32 reference mirroring the PyTorch forward exactly."""
    B, N, C = x_tokens.shape
    H = math.isqrt(N)
    if N == H * H + 1:
        x_tokens = x_tokens[:, 1:, :]
    K = fc_weight.shape[0]
    x = jnp.transpose(x_tokens, (0, 2, 1)).reshape(B, C, H, H)
    y = jnp.einsum("bchw,kc->bkhw", x, fc_weight.reshape(K, C)) \
        + fc_bias[None, :, None, None]
    return jnp.transpose(y, (0, 2, 3, 1))


if __name__ == "__main__":
    # Small, deterministic synthetic setup: ViT-like tokens with a cls token.
    B = 2          # batch
    H = 4          # spatial side -> N = H*H + 1 = 17 tokens
    C = 32         # base.num_features
    K = 48         # base.num_classes
    N = H * H + 1

    key = jax.random.PRNGKey(0)
    kx, kw, kb = jax.random.split(key, 3)
    x_tokens = jax.random.normal(kx, (B, N, C), dtype=jnp.float32)
    fc_weight = 0.02 * jax.random.normal(kw, (K, C, 1, 1), dtype=jnp.float32)
    fc_bias = 0.01 * jax.random.normal(kb, (K,), dtype=jnp.float32)

    ref = _reference(x_tokens, fc_weight, fc_bias)

    # Default fast path: bf16 operands, f32 MXU accumulation.
    out = jax.block_until_ready(token_label_head(x_tokens, fc_weight, fc_bias))
    assert out.shape == (B, H, H, K), out.shape
    assert jnp.allclose(out, ref, atol=2e-2, rtol=2e-2), "bf16 path mismatch"

    # f32 parity path (per correctness feedback: don't rely only on loose tol).
    out32 = jax.block_until_ready(
        token_label_head(x_tokens, fc_weight, fc_bias,
                         compute_dtype=jnp.float32))
    assert jnp.allclose(out32, ref, atol=1e-3, rtol=1e-3), "f32 path mismatch"

    print("KERNEL_OK")
</pallas_src>

<mosaic_0001>
module attributes {stable_mosaic.version = 11 : i64} {
  func.func @_token_label_head_kernel(%arg0: i32, %arg1: i32, %arg2: memref<16x32xf32, #tpu.memory_space<vmem>>, %arg3: memref<32x48xbf16, #tpu.memory_space<vmem>>, %arg4: memref<1x48xf32, #tpu.memory_space<vmem>>, %arg5: memref<16x48xf32, #tpu.memory_space<vmem>>) attributes {dimension_semantics = [#tpu.dimension_semantics<parallel>, #tpu.dimension_semantics<parallel>], iteration_bounds = array<i64: 1, 2>, scalar_prefetch = 0 : i64, scratch_operands = 0 : i64, tpu.core_type = #tpu.core_type<tc>, window_params = [{transform_indices = @transform_0, window_bounds = array<i64: 16, 32>}, {transform_indices = @transform_1, window_bounds = array<i64: 32, 48>}, {transform_indices = @transform_2, window_bounds = array<i64: 1, 48>}, {transform_indices = @transform_3, window_bounds = array<i64: 16, 48>}]} {
    %c0 = arith.constant 0 : index
    %c0_0 = arith.constant 0 : index
    %0 = vector.load %arg2[%c0, %c0_0] : memref<16x32xf32, #tpu.memory_space<vmem>>, vector<16x32xf32>
    %1 = arith.truncf %0 : vector<16x32xf32> to vector<16x32xbf16>
    %c0_1 = arith.constant 0 : index
    %c0_2 = arith.constant 0 : index
    %2 = vector.load %arg3[%c0_1, %c0_2] : memref<32x48xbf16, #tpu.memory_space<vmem>>, vector<32x48xbf16>
    %cst = arith.constant dense<0.000000e+00> : vector<16x48xf32>
    %3 = tpu.matmul %1, %2, %cst {dimension_numbers = #tpu.dot_dimension_numbers<[1], [0], [0], [1], [0, 0, 1, 1], [], []>} : vector<16x32xbf16>, vector<32x48xbf16>, vector<16x48xf32> -> vector<16x48xf32>
    %c0_3 = arith.constant 0 : index
    %c0_4 = arith.constant 0 : index
    %4 = vector.load %arg4[%c0_3, %c0_4] : memref<1x48xf32, #tpu.memory_space<vmem>>, vector<1x48xf32>
    %5 = vector.broadcast %4 : vector<1x48xf32> to vector<16x48xf32>
    %6 = arith.addf %3, %5 : vector<16x48xf32>
    %c0_5 = arith.constant 0 : index
    %c0_6 = arith.constant 0 : index
    %7 = vector.load %arg5[%c0_5, %c0_6] : memref<16x48xf32, #tpu.memory_space<vmem>>, vector<16x48xf32>
    tpu.vector_store %arg5[%c0_5, %c0_6], %6 {strides = array<i32>} : memref<16x48xf32, #tpu.memory_space<vmem>>, vector<16x48xf32>,
    return
  }
  func.func @transform_0(%arg0: i32, %arg1: i32) -> (i32, i32) {
    %c0_i32 = arith.constant 0 : i32
    %c0_i32_0 = arith.constant 0 : i32
    return %arg1, %c0_i32 : i32, i32
  }
  func.func @transform_1(%arg0: i32, %arg1: i32) -> (i32, i32) {
    %c0_i32 = arith.constant 0 : i32
    %c0_i32_0 = arith.constant 0 : i32
    return %c0_i32, %arg0 : i32, i32
  }
  func.func @transform_2(%arg0: i32, %arg1: i32) -> (i32, i32) {
    %c0_i32 = arith.constant 0 : i32
    %c0_i32_0 = arith.constant 0 : i32
    return %c0_i32, %arg0 : i32, i32
  }
  func.func @transform_3(%arg0: i32, %arg1: i32) -> (i32, i32) {
    %c0_i32 = arith.constant 0 : i32
    return %arg1, %arg0 : i32, i32
  }
}

</mosaic_0001>

<bundles_post_ra>
// kernel: tpu_custom_call.1
= control target key start
LH: loop header
LB: loop body
LE: loop exit
PB: predicated region body
PF: predicated region fallthrough
CT: control target
= control target key end

     0   :  { %8 = vsyncpa [#allocation3], 0  ;;  %s955_s0 = inlined_call_operand.hbm [shape: f32[32,32], index: 0, kind: input, shape index: {}]   ;;  %s956_s1 = inlined_call_operand.hbm [shape: bf16[32,48], index: 1, kind: input, shape index: {}]   ;;  %s957_s2 = inlined_call_operand.vmem [shape: f32[1,48], index: 2, kind: input, shape index: {}]   ;;  %s958_s3 = inlined_call_operand.hbm [shape: f32[32,48], index: 3, kind: output, shape index: {}]  }
   0x1   :  { %10 = vsyncpa [#allocation3 + $0x1], 0 }
   0x2   :  { %11 = vsyncpa [#allocation6], 0 }
   0x3   :  { %12 = vsyncpa [#allocation4], 0 }
   0x4   :  { %14 = vsyncpa [#allocation4 + $0x1], 0  ;;  %s733_s12 = smov 0   ;;  %s735_s13 = smov 0  }
   0x5   :  { %s737_s14 = smov 0   ;;  %s739_s15 = smov 0  }
   0x6   :  { %s741_s16 = smov 0   ;;  %s743_s17 = smov 0  }
   0x7 LB: > { %s438_s18 = sadd.s32 4294967295, %s700_s17   ;;  %s439_s19 = sadd.s32 4294967294, %s700_s17   ;;  %s700_s17 = sphi %s743_s17, %s20_s17   ;;  %s696_s16 = sphi %s741_s16, %s982_s16   ;;  %s692_s15 = sphi %s739_s15, %s981_s15   ;;  %s688_s14 = sphi %s737_s14, %s980_s14   ;;  %s684_s13 = sphi %s735_s13, %s979_s13   ;;  %s680_s12 = sphi %s733_s12, %s978_s12  }
   0x8   : > { %p52_p0 = scmp.ne.s32.totalorder %s684_s13, %s680_s12  ;;  %p767_p1 = scmp.eq.s32.totalorder %s438_s18, 0 }
   0x9   : > { %p771_p2 = scmp.eq.s32.totalorder %s438_s18, 1  ;;  %p136_p3 = scmp.eq.s32.totalorder %s439_s19, 1 }
   0xa   : > { %s963_s20 = scalar_select %p767_p1, 1, 0 }
   0xb   : > { %s964_s21 = scalar_select %p771_p2, 1, 0 }
   0xc   : > { %p777_p4 = por %p767_p1, %p52_p0  ;;  %p440_p5 = scmp.ge.s32.totalorder %s700_s17, 1 }
   0xd   : > { %p782_p6 = por %p136_p3, %p52_p0  ;;  %p143_p7 = scmp.lt.s32.totalorder %s700_s17, 3 }
   0xe   : > { %s965_s22 = scalar_select %p777_p4, 1, 0 }
   0xf   : > { %s966_s23 = scalar_select %p782_p6, 1, 0 }
  0x10   : > { %p787_p8 = pnand %p440_p5, %p143_p7  ;;  %s702_s25 = smov [#allocation5]  }
  0x11   : > { %s157_s26 = sshll.u32 %s702_s25, 4  ;;  %s29_s28 = sadd.s32 1, %s696_s16  ;;  %s158_s26 = int_to_ptr.vmem [resolvable:$true] %s157_s26 }
  0x12   : > { %s967_s24 = scalar_select %p787_p8, 1, 0 }
  0x13   : > { %p481_p9 = pneg %p787_p8  ;;  %s556_s4 = scalar_lea.hbm %s956_s1, 256 }
  0x14   : > { %p557_p12 = scmp.ne.s32.totalorder %s956_s1, %s556_s4  ;;  %p563_p5 = scmp.lt.u32.totalorder %s556_s4, %s956_s1 }
  0x15   : > { %p796_p11 = pnand %p481_p9, %p767_p1 }
  0x17   : > { %p558_p13 = pneg %p796_p11 }
  0x19   : > { %p559_p0 = pnand %p558_p13, %p557_p12 }
  0x1b   : > { %p560_p3 = pneg %p559_p0 }
  0x1d   : > { %p565_p7 = pnand %p563_p5, %p560_p3 }
  0x1f   : > { %568 = shalt.err (!%p565_p7)
}
  0x20   : > { %s569_s9 = scalar_lea.vmem %s158_s26, 256  ;;  %p577_p1 = scmp.lt.s32.totalorder %s158_s26, %s158_s26 }
  0x21   : > { %p570_p9 = scmp.ne.s32.totalorder %s158_s26, %s569_s9  ;;  %p578_p4 = scmp.lt.s32.totalorder %s569_s9, %s569_s9 }
  0x23   : > { %p572_p10 = pnand %p570_p9, %p558_p13  ;;  %p579_p8 = por %p578_p4, %p577_p1 }
  0x25   : > { %p573_p6 = pneg %p572_p10 }
  0x27   : > { %p580_p2 = pnand %p579_p8, %p573_p6 }
  0x29   : > { %583 = shalt.err (!%p580_p2)
}
  0x2a   : > { %s703_s10 = smov 64   ;;  %s704_s11 = smov 4  }
  0x2b   : > { %484 = dma.hbm_to_vmem [thread:$0]  (!%p796_p11), %s956_s1, 256, %s158_s26, [#allocation6], %s703_s10, %s703_s10, %s704_s11  }
  0x2c   : > { %p30_p1 = scmp.ge.s32.totalorder %s29_s28, 2  ;;  %s39_s25 = sadd.s32 1, %s688_s14 }
  0x2d   : > { %p46_p2 = scmp.ne.s32.totalorder %s688_s14, %s684_s13  ;;  %p47_p4 = scmp.eq.s32.totalorder %s700_s17, 0 }
  0x2e   : > { %s984_s28 = smov (%p30_p1, %s29_s28), 0  ;;  %p970_p8 = scmp.ne.s32.totalorder %s964_s21, 0 }
  0x2f   : > { %p823_p6 = por %p47_p4, %p46_p2  ;;  %s36_s27 = ssub.s32 %s696_s16, %s984_s28 }
  0x30   : > { %p829_p10 = por %p970_p8, %p46_p2  ;;  %p494_p12 = scmp.lt.s32.totalorder %s700_s17, 2 }
  0x31   : > { %p37_p11 = scmp.eq.s32.totalorder %s36_s27, 0  ;;  %s177_s26 = sand.u32 1, %s688_s14  }
  0x32   : > { %s444_s4 = sshll.u32 %s177_s26, 4  ;;  %s460_s6 = sshll.u32 %s696_s16, 8 }
  0x33   : > { %s838_s5 = scalar_select %p37_p11, %s688_s14, %s39_s25  }
  0x34   : > { %s844_s9 = scalar_lea.hbm %s955_s0, %s460_s6  ;;  %s181_s21 = scalar_lea.vmem [#allocation2], %s444_s4 }
  0x35   : > { %s188_s10 = sshll.u32 %s181_s21, 4  ;;  %p850_p13 = pnand %p494_p12, %p823_p6  ;;  %s846_s10 = int_to_ptr.vmem [resolvable:$true] %s188_s10 }
  0x36   : > { %s854_s18 = scalar_lea.sflag [#allocation3], %s177_s26  ;;  %s584_s19 = scalar_lea.hbm %s844_s9, 256 }
  0x37   : > { %p585_p0 = scmp.ne.s32.totalorder %s844_s9, %s584_s19  ;;  %p586_p3 = pneg %p850_p13 }
  0x38   : > { %s589_s29 = scalar_lea.hbm %s955_s0, 512  ;;  %p590_p9 = scmp.lt.u32.totalorder %s844_s9, %s955_s0 }
  0x39   : > { %p587_p5 = pnand %p586_p3, %p585_p0  ;;  %p591_p1 = scmp.lt.u32.totalorder %s589_s29, %s584_s19 }
  0x3a   : > { %p593_p4 = scmp.lt.u32.totalorder %s584_s19, %s844_s9 }
  0x3b   : > { %p588_p7 = pneg %p587_p5  ;;  %p592_p2 = por %p591_p1, %p590_p9 }
  0x3d   : > { %p594_p6 = por %p593_p4, %p592_p2 }
  0x3f   : > { %p595_p8 = pnand %p594_p6, %p588_p7 }
  0x41   : > { %598 = shalt.err (!%p595_p8)
}
  0x42   : > { %s599_s26 = scalar_lea.vmem %s846_s10, 256  ;;  %s705_s7 = smov [#allocation2]  }
  0x43   : > { %p600_p12 = scmp.ne.s32.totalorder %s846_s10, %s599_s26  ;;  %s604_s8 = sshll.u32 %s705_s7, 4  ;;  %s605_s8 = int_to_ptr.vmem [resolvable:$false] %s604_s8 }
  0x44   : > { %s606_s21 = scalar_lea.vmem %s605_s8, 512  ;;  %p607_p5 = scmp.lt.s32.totalorder %s846_s10, %s605_s8 }
  0x45   : > { %p602_p11 = pnand %p600_p12, %p586_p3  ;;  %p608_p9 = scmp.lt.s32.totalorder %s606_s21, %s599_s26 }
  0x47   : > { %p603_p0 = pneg %p602_p11  ;;  %p609_p1 = por %p608_p9, %p607_p5 }
  0x49   : > { %p610_p2 = pnand %p609_p1, %p603_p0 }
  0x4b   : > { %613 = shalt.err (!%p610_p2)
}
  0x4c   : > { %s706_s19 = smov 128   ;;  %s707_s25 = smov 8  }
  0x4d   : > { %488 = dma.hbm_to_vmem [thread:$0]  (!%p850_p13), %s844_s9, 256, %s846_s10, %s854_s18, %s706_s19, %s706_s19, %s707_s25  }
  0x4e   : > { %p973_p3 = scmp.ne.s32.totalorder %s967_s24, 0 }
  0x4f   : > { %s885_s27 = sand.u32 (!%p973_p3), 1, %s684_s13   ;;  %p974_p7 = scmp.ne.s32.totalorder (!%p973_p3), %s965_s22, 0 }
  0x50   : > { %200 = sbr.rel (%p973_p3) target bundleno = 331 (0x14b), region = 32  ;;  %s448_s29 = sshll.u32 (!%p973_p3), %s885_s27, 4 }
  0x51   : > { %s203_s4 = scalar_lea.sflag (!%p973_p3), [#allocation3], %s885_s27  ;;  %s206_s6 = scalar_lea.vmem (!%p973_p3), [#allocation2], %s448_s29 }
  0x57   : > { %667 = dma.done.wait (%p974_p7), %s203_s4, 256  }
  0x58   : > { %669 = vsyncadd (%p974_p7), %s203_s4, 4294967040  ;;  %p975_p4 = scmp.ne.s32.totalorder %s963_s20, 0 }
  0x5a   : > { %671 = dma.done.wait (%p975_p4), [#allocation6], 256  }
  0x5b   : > { %673 = vsyncadd (%p975_p4), [#allocation6], 4294967040  ;;  %v708_v0 = vmov 0.0   ;;  %vm709_vm0 = vmmov 0   ;;  %v554_v1 = vld [vmem:[#allocation5] sm:$0xff]   ;;  %v555_v2 = vld [vmem:[#allocation5 + $0x8] sm:$0xff]  }
  0x5c   : > { %465 = vmatprep.subr.bf16.mxu0 %v708_v0  ;;  %469 = vmatprep.mubr.msk.bf16.mxu0 %vm709_vm0, %v708_v0  ;;  %v242_v3 = vld [vmem:[%s206_s6] sm:$0xff]  ;;  %v243_v4 = vld [vmem:[%s206_s6 + $0x8] sm:$0xff]  ;;  %vm268_vm1 = vcmask 261120   ;;  %s235_s20 = scalar_lea.vmem [#allocation7], %s448_s29  ;;  %s461_s10 = sshll.u32 %s692_s15, 8  ;;  %vm313_vm2 = vcmask 392192  }
  0x5d   : > { %466 = vmatpush3.bf16.msra.mxu0 %v554_v1  ;;  %v244_v5 = vpack.c.bf16 %v243_v4, %v242_v3  ;;  %v451_v6 = vld [vmem:[%s957_s2] ss:$0 sm:$0xff]  ;;  %s331_s9 = sshll.u32 %s235_s20, 4  ;;  %s906_s26 = scalar_lea.hbm %s958_s3, %s461_s10  ;;  %s901_s9 = int_to_ptr.vmem [resolvable:$true] %s331_s9 }
  0x5e   : > { %467 = vmatprep.subr.bf16.mxu0 %v708_v0  ;;  %s317_s15 = scalar_lea.sflag [#allocation4], %s885_s27  ;;  %s614_s7 = scalar_lea.vmem %s901_s9, 256 }
  0x5f   : > { %p615_p13 = scmp.ne.s32.totalorder %s901_s9, %s614_s7  ;;  %s710_s8 = smov [#allocation7]  }
  0x60   : > { %s618_s21 = sshll.u32 %s710_s8, 4  ;;  %s619_s21 = int_to_ptr.vmem [resolvable:$false] %s618_s21 }
  0x61   : > { %468 = vmatpush3.bf16.msra.mxu0 %v555_v2  ;;  %p616_p6 = pnand %p615_p13, %p829_p10  ;;  %s620_s19 = scalar_lea.vmem %s619_s21, 512 }
  0x62   : > { %p621_p12 = scmp.lt.s32.totalorder %s901_s9, %s619_s21  ;;  %p622_p11 = scmp.lt.s32.totalorder %s620_s19, %s614_s7 }
  0x63   : > { %p617_p8 = pneg %p616_p6 }
  0x64   : > { %470 = vmatmul.mubr.msk.bf16.vlgmr.msra.gmra.mrb[0].mxu0 %vm268_vm1, %v244_v5  ;;  %p623_p0 = por %p622_p11, %p621_p12 }
  0x66   : > { %p624_p5 = pnand %p623_p0, %p617_p8 }
 0x137   : > { %v306_v7 = vpop.f32.mrb[0].mxu0 }
 0x138   : > { %v307_v8 = vadd.f32 %v451_v6, %v306_v7  ;;  %v471_v9 = vpop.f32.mrb[1].mxu0 }
 0x139   : > { %v309_v10 = vpop.f32.mrb[2].mxu0 }
 0x13a   : > { %314 = vst.msk [vmem:[%s235_s20] sm:$0xff] %vm313_vm2, %v307_v8  ;;  %v310_v11 = vadd.f32 %v451_v6, %v309_v10  ;;  %v472_v12 = vpop.f32.mrb[3].mxu0 }
 0x13c   : > { %315 = vst.msk [vmem:[%s235_s20 + $0x8] sm:$0xff] %vm313_vm2, %v310_v11 }
 0x13d   : > { %627 = shalt.err (!%p624_p5)
}
 0x13e   : > { %s628_s25 = scalar_lea.hbm %s906_s26, 256  ;;  %s632_s6 = scalar_lea.hbm %s958_s3, 512 }
 0x13f   : > { %p629_p9 = scmp.ne.s32.totalorder %s906_s26, %s628_s25  ;;  %p633_p3 = scmp.lt.u32.totalorder %s906_s26, %s958_s3 }
 0x140   : > { %p634_p7 = scmp.lt.u32.totalorder %s632_s6, %s628_s25  ;;  %p636_p13 = scmp.lt.u32.totalorder %s628_s25, %s906_s26 }
 0x141   : > { %p630_p1 = pnand %p629_p9, %p829_p10 }
 0x142   : > { %p635_p4 = por %p634_p7, %p633_p3 }
 0x143   : > { %p631_p2 = pneg %p630_p1 }
 0x144   : > { %p637_p6 = por %p636_p13, %p635_p4 }
 0x146   : > { %p638_p8 = pnand %p637_p6, %p631_p2 }
 0x148   : > { %641 = shalt.err (!%p638_p8)
}
 0x149   : > { %s711_s20 = smov 128   ;;  %s712_s10 = smov 8  }
 0x14a   : > { %479 = dma.vmem_to_hbm [thread:$0]  (%p829_p10), %s901_s9, 256, %s906_s26, %s317_s15, %s711_s20, %s711_s20, %s712_s10  }
 0x14b PF: > { %s346_s11 = sand.u32 1, %s680_s12   ;;  %p976_p12 = scmp.ne.s32.totalorder %s966_s23, 0 }
 0x14c   : > { %p977_p11 = scmp.ge.s32.totalorder %s700_s17, 2  ;;  %s347_s18 = scalar_lea.sflag [#allocation4], %s346_s11 }
 0x14e   : > { %p490_p0 = pnand %p977_p11, %p976_p12 }
 0x150   : > { %675 = dma.done.wait (!%p490_p0), %s347_s18, 256  }
 0x151   : > { %677 = vsyncadd (!%p490_p0), %s347_s18, 4294967040  ;;  %s20_s17 = sadd.s32 1, %s700_s17   ;;  %s978_s12 = smov %s684_s13 }
 0x152   : > { %p17_p5 = scmp.ge.s32.totalorder %s20_s17, 4   ;;  %s979_s13 = smov %s688_s14 }
 0x153   : > { %s980_s14 = smov %s838_s5  ;;  %s981_s15 = smov %s696_s16 }
 0x154   : > { %s982_s16 = smov %s984_s28  ;;  %19 = sbr.rel (!%p17_p5) target bundleno = 7 (0x7), region = 85 }
 0x15b   :  { %352 = vsyncpa [#allocation3], 1 }
 0x15c   :  { %354 = vsyncpa [#allocation3 + $0x1], 1 }
 0x15d   :  { %355 = vsyncpa [#allocation6], 1 }
 0x15e   :  { %356 = vsyncpa [#allocation4], 1 }
 0x15f   :  { %358 = vsyncpa [#allocation4 + $0x1], 1 }

</bundles_post_ra>
